<compile_context>
chip_gen: v6e
topology: v6e:2x2x1
jax: 0.10.0
libtpu: 0.0.40
codegen_flags: <defaults>
</compile_context>

<pallas_src>
import functools

import numpy as np

import jax
import jax.numpy as jnp
from jax import lax
from jax.experimental import pallas as pl
from jax.experimental.pallas import tpu as pltpu


def _accuracy_kernel(pred_ref, tgt_ref, thr_ref, out_ref, *, tile_rows,
                     n_real, exact_ties):
    """One grid step processes a (tile_rows, Cpad) tile of predictions.

    pred_ref: (tile_rows, Cpad) native-dtype VMEM (no full-tile cast)
    tgt_ref : (tile_rows, 1)    int32 VMEM
    thr_ref : (1, 128)          int32 VMEM (lane kk holds topk[kk], else 0)
    out_ref : (1, 8, 128)       float32 VMEM partial counts for this tile
    """
    i = pl.program_id(0)

    p = pred_ref[...]                                     # (tb, C) native dtype
    tb, c = p.shape
    tgt = tgt_ref[...]                                    # (tb, 1) i32

    cls = lax.broadcasted_iota(jnp.int32, (tb, c), 1)     # class indices
    onehot = cls == tgt                                   # (tb, C) bool

    # Target-class score per row (pad columns hold -inf so they never win).
    neg_inf = jnp.array(-jnp.inf, dtype=p.dtype)
    tval = jnp.max(jnp.where(onehot, p, neg_inf), axis=1, keepdims=True)

    # Rank of the target class: one fused lane reduction in native dtype.
    beats = p > tval
    if exact_ties:
        beats = beats | ((p == tval) & (cls > tgt))       # larger index wins ties
    rank = jnp.sum(beats.astype(jnp.int32), axis=1, keepdims=True)  # (tb, 1)

    # Mask out padding rows appended by the wrapper.
    row_idx = i * tile_rows + lax.broadcasted_iota(jnp.int32, (tb, 1), 0)
    valid = row_idx < n_real                              # (tb, 1) bool

    # Per-k correctness: rank < topk[kk] in lane kk (unused lanes hold 0,
    # and rank >= 0, so they contribute nothing).
    correct = ((rank < thr_ref[...]) & valid).astype(jnp.float32)   # (tb, 128)

    # Reduce (tb, 128) -> (8, 128) with pure VALU adds (sublane-group fold);
    # the remaining tiny reduction finishes in XLA outside the kernel.
    psum = jnp.sum(correct.reshape(tb // 8, 8, 128), axis=0)        # (8, 128)
    out_ref[...] = psum.reshape(out_ref.shape)


def _vmem_capacity_bytes():
    """Best-effort trace-time VMEM capacity query (conservative fallback)."""
    try:
        info = pltpu.get_tpu_info()
        for name in ("vmem_capacity_bytes", "vmem_size_bytes", "vmem_bytes"):
            v = getattr(info, name, None)
            if v:
                return int(v)
    except Exception:
        pass
    return 64 << 20  # v7x-sized: safest assumption


def accuracy_pallas(pred, target, topk=(1,), exact_ties=True):
    """Top-k accuracy computed with a Pallas TPU kernel.

    pred:   (N, C) float array (streamed & compared in its native dtype)
    target: (N,)   int array
    topk:   int or tuple of ints (static)
    Returns a float32 scalar (if topk is int) or tuple of float32 scalars.
    """
    return_single = isinstance(topk, int)
    if return_single:
        topk = (topk,)
    topk = tuple(int(k) for k in topk)
    assert len(topk) <= 128

    n, c = pred.shape
    if not jnp.issubdtype(pred.dtype, jnp.floating):
        pred = pred.astype(jnp.float32)
    itemsize = jnp.dtype(pred.dtype).itemsize

    # ---- pad the class dim to a multiple of 128 with -inf ---------------------
    c_pad = ((c + 127) // 128) * 128
    if c_pad != c:
        pred = jnp.pad(pred, ((0, 0), (0, c_pad - c)),
                       constant_values=-jnp.inf)

    # ---- generation-aware tile sizing -----------------------------------------
    vmem_cap = _vmem_capacity_bytes()
    if vmem_cap >= (100 << 20):        # v5e / v6e: 128 MiB VMEM
        step_bytes = 8 << 20
        vmem_budget = 96 << 20
    else:                              # v7x: 64 MiB VMEM
        step_bytes = 4 << 20
        vmem_budget = 52 << 20

    # Per-row VMEM footprint: pred row + lane-padded (tb,1) i32 target row.
    per_row = c_pad * itemsize + 512
    # Byte-based row budget (no hard row cap): ~step_bytes streamed per step,
    # and double-buffered in/out + ~3 f32-tile temporaries must fit the budget.
    tb_step = max(8, (step_bytes // per_row) // 8 * 8)
    per_row_budget = 2 * per_row + 3 * c_pad * 4
    tb_budget = max(8, ((vmem_budget - (4 << 20)) // per_row_budget) // 8 * 8)

    n_ceil = ((n + 7) // 8) * 8
    tb = min(tb_step, tb_budget, n_ceil)
    # Split single-tile grids so the "parallel" grid axis can use both
    # TensorCores on v7x (and megacore sharding elsewhere).
    if tb >= n_ceil and n_ceil >= 16:
        tb = ((n_ceil // 2 + 7) // 8) * 8
    tb = max(8, tb)

    # ---- pad N up to a multiple of the tile (pad rows masked in-kernel) -------
    n_pad = ((n + tb - 1) // tb) * tb
    if n_pad != n:
        pred = jnp.pad(pred, ((0, n_pad - n), (0, 0)))
        target = jnp.pad(target, (0, n_pad - n))
    grid = n_pad // tb

    tgt_2d = target.astype(jnp.int32).reshape(n_pad, 1)

    # Precomputed per-k thresholds (hoisted out of the grid body): lane kk of a
    # single 128-lane row holds topk[kk]; unused lanes hold 0.
    thr_host = np.zeros((1, 128), np.int32)
    thr_host[0, :len(topk)] = np.asarray(topk, np.int32)
    thr_row = jnp.asarray(thr_host)

    num_k = len(topk)
    tile_pred_bytes = tb * c_pad * itemsize
    vmem_need = 2 * tb * per_row + 3 * tb * c_pad * 4 + (2 << 20)
    vmem_limit = int(min(max(vmem_need, 16 << 20), vmem_budget))

    cost = pl.CostEstimate(
        flops=6 * n_pad * c_pad,
        transcendentals=0,
        bytes_accessed=(n_pad * c_pad * itemsize + n_pad * 4
                        + grid * 8 * 128 * 4 + 512))

    partials = pl.pallas_call(
        functools.partial(_accuracy_kernel, tile_rows=tb, n_real=n,
                          exact_ties=exact_ties),
        out_shape=jax.ShapeDtypeStruct((grid, 8, 128), jnp.float32),
        grid_spec=pltpu.PrefetchScalarGridSpec(
            num_scalar_prefetch=0,
            grid=(grid,),
            in_specs=[
                pl.BlockSpec((tb, c_pad), lambda i: (i, 0)),
                pl.BlockSpec((tb, 1), lambda i: (i, 0)),
                pl.BlockSpec((1, 128), lambda i: (0, 0)),
            ],
            out_specs=pl.BlockSpec((1, 8, 128), lambda i: (i, 0, 0)),
        ),
        compiler_params=pltpu.CompilerParams(
            dimension_semantics=("parallel",),
            vmem_limit_bytes=vmem_limit),
        cost_estimate=cost,
    )(pred, tgt_2d, thr_row)

    # Tiny epilogue in XLA: sum the per-tile partials and scale.
    counts = jnp.sum(partials, axis=(0, 1))          # (128,)
    accs = counts * (100.0 / n)
    res = tuple(accs[kk] for kk in range(num_k))
    return res[0] if return_single else res


class Accuracy:
    """JAX/Pallas equivalent of mmcls Accuracy module."""

    def __init__(self, topk=(1,)):
        self.topk = topk

    def __call__(self, pred, target, multi_cls=False):
        if multi_cls:
            # TODO(synk): roc_auc_score-based multi-class AUC requires a
            # full-dataset sort; no clean Pallas equivalent implemented.
            raise NotImplementedError("multi_cls AUC not implemented in Pallas")
        return accuracy_pallas(pred, target, self.topk)


def _reference_accuracy(pred, target, topk):
    """Pure-numpy reference matching accuracy_numpy semantics."""
    pred = np.asarray(pred, dtype=np.float64)
    target = np.asarray(target)
    res = []
    maxk = max(topk)
    num = pred.shape[0]
    pred_label = pred.argsort(axis=1)[:, -maxk:][:, ::-1]
    for k in topk:
        correct_k = np.logical_or.reduce(
            pred_label[:, :k] == target.reshape(-1, 1), axis=1)
        res.append(correct_k.sum() * 100.0 / num)
    return res


if __name__ == "__main__":
    key = jax.random.PRNGKey(0)
    topk = (1, 5)
    acc_mod = Accuracy(topk=topk)

    k1, k2, k3, k4, k5, k6 = jax.random.split(key, 6)

    # Case 1: aligned shapes, f32.
    N1, C1 = 16, 128
    pred1 = jax.random.normal(k1, (N1, C1), dtype=jnp.float32)
    tgt1 = jax.random.randint(k2, (N1,), 0, C1, dtype=jnp.int32)
    out1 = acc_mod(pred1, tgt1)
    out1 = tuple(jax.block_until_ready(o) for o in out1)
    ref1 = _reference_accuracy(pred1, tgt1, topk)
    for o, r in zip(out1, ref1):
        assert abs(float(o) - float(r)) < 1e-3, (float(o), float(r))

    # Case 2: ragged shapes (exercises N- and C-padding + row masking), f32.
    N2, C2 = 13, 200
    pred2 = jax.random.normal(k3, (N2, C2), dtype=jnp.float32)
    tgt2 = jax.random.randint(k4, (N2,), 0, C2, dtype=jnp.int32)
    out2 = acc_mod(pred2, tgt2)
    out2 = tuple(jax.block_until_ready(o) for o in out2)
    ref2 = _reference_accuracy(pred2, tgt2, topk)
    for o, r in zip(out2, ref2):
        assert abs(float(o) - float(r)) < 1e-3, (float(o), float(r))

    # Case 3: bf16 logits (native-dtype compare path, no in-kernel f32 cast).
    N3, C3 = 24, 160
    pred3 = jax.random.normal(k5, (N3, C3), dtype=jnp.float32).astype(jnp.bfloat16)
    tgt3 = jax.random.randint(k6, (N3,), 0, C3, dtype=jnp.int32)
    out3 = acc_mod(pred3, tgt3)
    out3 = tuple(jax.block_until_ready(o) for o in out3)
    ref3 = _reference_accuracy(np.asarray(pred3, dtype=np.float32), tgt3, topk)
    for o, r in zip(out3, ref3):
        assert abs(float(o) - float(r)) < 1e-3, (float(o), float(r))

    print("KERNEL_OK")
</pallas_src>

<mosaic_0001>
module attributes {stable_mosaic.version = 11 : i64} {
  func.func @_accuracy_kernel(%arg0: i32, %arg1: memref<8x128xf32, #tpu.memory_space<vmem>>, %arg2: memref<8x1xi32, #tpu.memory_space<vmem>>, %arg3: memref<1x128xi32, #tpu.memory_space<vmem>>, %arg4: memref<1x8x128xf32, #tpu.memory_space<vmem>>) attributes {dimension_semantics = [#tpu.dimension_semantics<parallel>], iteration_bounds = array<i64: 2>, scalar_prefetch = 0 : i64, scratch_operands = 0 : i64, tpu.core_type = #tpu.core_type<tc>, window_params = [{transform_indices = @transform_0, window_bounds = array<i64: 8, 128>}, {transform_indices = @transform_1, window_bounds = array<i64: 8, 1>}, {pipeline_mode = #tpu.pipeline_mode<synchronous>, transform_indices = @transform_2, window_bounds = array<i64: 1, 128>}, {transform_indices = @transform_3, window_bounds = array<i64: 1, 8, 128>}]} {
    %c0 = arith.constant 0 : index
    %c0_0 = arith.constant 0 : index
    %0 = vector.load %arg1[%c0, %c0_0] : memref<8x128xf32, #tpu.memory_space<vmem>>, vector<8x128xf32>
    %c0_1 = arith.constant 0 : index
    %c0_2 = arith.constant 0 : index
    %1 = vector.load %arg2[%c0_1, %c0_2] : memref<8x1xi32, #tpu.memory_space<vmem>>, vector<8x1xi32>
    %2 = tpu.iota {dimensions = array<i32: 1>} : vector<8x128xi32>
    %3 = vector.broadcast %1 : vector<8x1xi32> to vector<8x128xi32>
    %4 = arith.cmpi eq, %2, %3 : vector<8x128xi32>
    %cst = arith.constant 0xFF800000 : f32
    %5 = vector.broadcast %cst : f32 to vector<8x128xf32>
    %6 = arith.select %4, %0, %5 : vector<8x128xi1>, vector<8x128xf32>
    %cst_3 = arith.constant dense<0xFF800000> : vector<8xf32>
    %7 = vector.multi_reduction <maximumf>, %6, %cst_3 [1] : vector<8x128xf32> to vector<8xf32>
    %8 = vector.shape_cast %7 : vector<8xf32> to vector<8x1xf32>
    %9 = vector.broadcast %8 : vector<8x1xf32> to vector<8x128xf32>
    %10 = arith.cmpf ogt, %0, %9 : vector<8x128xf32>
    %11 = vector.broadcast %8 : vector<8x1xf32> to vector<8x128xf32>
    %12 = arith.cmpf oeq, %0, %11 : vector<8x128xf32>
    %13 = vector.broadcast %1 : vector<8x1xi32> to vector<8x128xi32>
    %14 = arith.cmpi sgt, %2, %13 : vector<8x128xi32>
    %15 = arith.andi %12, %14 : vector<8x128xi1>
    %16 = arith.ori %10, %15 : vector<8x128xi1>
    %17 = arith.extui %16 : vector<8x128xi1> to vector<8x128xi32>
    %cst_4 = arith.constant dense<0> : vector<8xi32>
    %18 = vector.multi_reduction <add>, %17, %cst_4 [1] : vector<8x128xi32> to vector<8xi32>
    %19 = vector.shape_cast %18 : vector<8xi32> to vector<8x1xi32>
    %c8_i32 = arith.constant 8 : i32
    %20 = arith.muli %arg0, %c8_i32 : i32
    %21 = tpu.iota {dimensions = array<i32: 0>} : vector<8x1xi32>
    %22 = vector.broadcast %20 : i32 to vector<8x1xi32>
    %23 = arith.addi %22, %21 : vector<8x1xi32>
    %c16_i32 = arith.constant 16 : i32
    %24 = vector.broadcast %c16_i32 : i32 to vector<8x1xi32>
    %25 = arith.cmpi slt, %23, %24 : vector<8x1xi32>
    %c0_5 = arith.constant 0 : index
    %c0_6 = arith.constant 0 : index
    %26 = vector.load %arg3[%c0_5, %c0_6] : memref<1x128xi32, #tpu.memory_space<vmem>>, vector<1x128xi32>
    %27 = vector.broadcast %19 : vector<8x1xi32> to vector<8x128xi32>
    %28 = vector.broadcast %26 : vector<1x128xi32> to vector<8x128xi32>
    %29 = arith.cmpi slt, %27, %28 : vector<8x128xi32>
    %30 = vector.broadcast %25 : vector<8x1xi1> to vector<8x128xi1>
    %31 = arith.andi %29, %30 : vector<8x128xi1>
    %32 = arith.extui %31 : vector<8x128xi1> to vector<8x128xi32>
    %33 = arith.sitofp %32 : vector<8x128xi32> to vector<8x128xf32>
    %34 = vector.shape_cast %33 : vector<8x128xf32> to vector<1x8x128xf32>
    %cst_7 = arith.constant dense<0.000000e+00> : vector<8x128xf32>
    %35 = vector.multi_reduction <add>, %34, %cst_7 [0] : vector<1x8x128xf32> to vector<8x128xf32>
    %36 = vector.shape_cast %35 : vector<8x128xf32> to vector<1x8x128xf32>
    %c0_8 = arith.constant 0 : index
    %c0_9 = arith.constant 0 : index
    %c0_10 = arith.constant 0 : index
    %37 = vector.load %arg4[%c0_8, %c0_9, %c0_10] : memref<1x8x128xf32, #tpu.memory_space<vmem>>, vector<1x8x128xf32>
    tpu.vector_store %arg4[%c0_8, %c0_9, %c0_10], %36 {strides = array<i32>} : memref<1x8x128xf32, #tpu.memory_space<vmem>>, vector<1x8x128xf32>,
    return
  }
  func.func @transform_0(%arg0: i32) -> (i32, i32) {
    %c0_i32 = arith.constant 0 : i32
    %c0_i32_0 = arith.constant 0 : i32
    return %arg0, %c0_i32 : i32, i32
  }
  func.func @transform_1(%arg0: i32) -> (i32, i32) {
    %c0_i32 = arith.constant 0 : i32
    %c0_i32_0 = arith.constant 0 : i32
    return %arg0, %c0_i32 : i32, i32
  }
  func.func @transform_2(%arg0: i32) -> (i32, i32) {
    %c0_i32 = arith.constant 0 : i32
    %c0_i32_0 = arith.constant 0 : i32
    %c0_i32_1 = arith.constant 0 : i32
    return %c0_i32, %c0_i32_0 : i32, i32
  }
  func.func @transform_3(%arg0: i32) -> (i32, i32, i32) {
    %c0_i32 = arith.constant 0 : i32
    %c0_i32_0 = arith.constant 0 : i32
    %c0_i32_1 = arith.constant 0 : i32
    return %arg0, %c0_i32, %c0_i32_0 : i32, i32, i32
  }
}

</mosaic_0001>

<bundles_post_ra>
// kernel: tpu_custom_call.1
= control target key start
LH: loop header
LB: loop body
LE: loop exit
PB: predicated region body
PF: predicated region fallthrough
CT: control target
= control target key end

     0   :  { %8 = vsyncpa [#allocation3], 0  ;;  %s563_s0 = inlined_call_operand.vmem [shape: f32[16,128], index: 0, kind: input, shape index: {}]   ;;  %s564_s1 = inlined_call_operand.vmem [shape: s32[16,1], index: 1, kind: input, shape index: {}]   ;;  %s565_s2 = inlined_call_operand.vmem [shape: s32[1,128], index: 2, kind: input, shape index: {}]   ;;  %s566_s3 = inlined_call_operand.hbm [shape: f32[2,8,128], index: 3, kind: output, shape index: {}]  }
   0x1   :  { %10 = vsyncpa [#allocation3 + $0x1], 0  ;;  %s457_s12 = smov 0   ;;  %s459_s13 = smov 0  }
   0x2   :  { %s461_s14 = smov 0   ;;  %s463_s15 = smov 0  }
   0x3 LB: > { %s478_s16 = sadd.s32 4294967295, %s432_s15   ;;  %s316_s17 = sadd.s32 4294967294, %s432_s15   ;;  %s432_s15 = sphi %s463_s15, %s572_s15   ;;  %s428_s14 = sphi %s461_s14, %s571_s14   ;;  %s424_s13 = sphi %s459_s13, %s570_s13   ;;  %s420_s12 = sphi %s457_s12, %s569_s12  }
   0x4   : > { %s482_s18 = sadd.s32 1, %s432_s15   ;;  %s96_s19 = sadd.s32 1, %s428_s14 }
   0x5   : > { %s93_s20 = ssub.s32 %s432_s15, %s482_s18  ;;  %p106_p0 = scmp.ne.s32.totalorder %s428_s14, %s424_s13 }
   0x6   : > { %p94_p1 = scmp.eq.s32.totalorder %s93_s20, 0  ;;  %p107_p2 = scmp.eq.s32.totalorder %s478_s16, 1 }
   0x7   : > { %p112_p3 = scmp.ne.s32.totalorder %s424_s13, %s420_s12  ;;  %p113_p4 = scmp.eq.s32.totalorder %s316_s17, 1 }
   0x8   : > { %s493_s21 = scalar_select %p94_p1, %s428_s14, %s96_s19  }
   0x9   : > { %p495_p5 = por %p107_p2, %p106_p0  ;;  %p499_p6 = por %p113_p4, %p112_p3 }
   0xa   : > { %p319_p7 = scmp.ge.s32.totalorder %s432_s15, 1  ;;  %p148_p8 = scmp.lt.s32.totalorder %s432_s15, 3 }
   0xc   : > { %p149_p9 = pnand %p319_p7, %p148_p8 }
   0xd   : > { %p175_p10 = scmp.lt.s32.totalorder (!%p149_p9), %s478_s16, 1  ;;  %s323_s5 = sshll.u32 (!%p149_p9), %s478_s16, 3 }
   0xe   : > { %152 = sbr.rel (%p149_p9) target bundleno = 458 (0x1ca), region = 32  ;;  %s172_s6 = sand.u32 (!%p149_p9), 1, %s424_s13  }
   0xf   : > { %s320_s7 = sshll.u32 (!%p149_p9), %s172_s6, 3  ;;  %s327_s10 = sshll.u32 (!%p149_p9), %s478_s16, 7 }
  0x10   : > { %s174_s11 = scalar_lea.vmem (!%p149_p9), [#allocation2], %s320_s7 }
  0x11   : > { %s245_s17 = sshll.u32 (!%p149_p9), %s174_s11, 4  ;;  %s524_s17 = int_to_ptr.vmem [resolvable:$true] %s245_s17 }
  0x12   : > { %s372_s26 = scalar_lea.vmem (!%p149_p9), %s524_s17, 128 }
  0x13   : > { %v434_v0 = vmov 0   ;;  %s176_s24 = scalar_select %p175_p10, %s478_s16, 1  ;;  %v185_v2 = vlaneseq  ;;  %v215_v15 = vstv %s323_s5  ;;  %v324_v21 = vld [vmem:[%s565_s2] ss:$0 sm:$0xff]  ;;  %v435_v23 = vmov 0.0  }
  0x14   : > { %371 = vset.pattern.permute.xlu0 %v434_v0  ;;  %p373_p11 = scmp.ne.s32.totalorder %s524_s17, %s372_s26  ;;  %s436_s16 = smov [#allocation2]  }
  0x15   : > { %s321_s25 = sshll.u32 %s176_s24, 3  ;;  %v186_v3 = vand.u32 127, %v185_v2  ;;  %v214_v13 = vshrl.u32 %v185_v2, 7  ;;  %s522_s24 = scalar_lea.hbm %s566_s3, %s327_s10 }
  0x16   : > { %s182_s28 = scalar_lea.vmem %s564_s1, %s321_s25  ;;  %s178_s4 = scalar_lea.vmem %s563_s0, %s321_s25 }
  0x17   : > { %v184_v1 = vld [vmem:[%s182_s28] sm:$0xff]  ;;  %v216_v17 = vadd.s32 %v215_v15, %v214_v13  ;;  %s232_s25 = scalar_lea.sflag [#allocation3], %s172_s6  ;;  %p374_p12 = pnand %p373_p11, %p495_p5 }
  0x18   : > { %188 = vperm.xlu0 %371, %v184_v1   ;;  %v183_v4 = vld [vmem:[%s178_s4] sm:$0xff]  ;;  %s376_s27 = sshll.u32 %s436_s16, 4  ;;  %s377_s27 = int_to_ptr.vmem [resolvable:$false] %s376_s27 }
  0x19   : > { %vm217_vm6 = vcmp.lt.s32.totalorder %v216_v17, 16  ;;  %p375_p13 = pneg %p374_p12  ;;  %s378_s28 = scalar_lea.vmem %s377_s27, 256 }
  0x1a   : > { %p379_p0 = scmp.lt.s32.totalorder %s524_s17, %s377_s27  ;;  %p380_p1 = scmp.lt.s32.totalorder %s378_s28, %s372_s26 }
  0x1c   : > { %p381_p2 = por %p380_p1, %p379_p0 }
  0x1e   : > { %p382_p3 = pnand %p381_p2, %p375_p13 }
  0x93   : > { %v189_v5 = vpop.permute.xlu0 %188 }
  0x94   : > { %vm190_vm0 = vcmp.eq.s32.totalorder %v186_v3, %v189_v5  ;;  %vm196_vm1 = vcmp.gt.s32.totalorder %v186_v3, %v189_v5 }
  0x95   : > { %v191_v6 = vsel %vm190_vm0, %v183_v4, -inf }
  0x96   : > { %192 = vmax.xlane.f32.xlu0 %v191_v6 }
 0x11f   : > { %v193_v7 = vpop.xlane.xlu0 %192 }
 0x120   : > { %vm194_vm2 = vcmp.gt.f32.partialorder %v183_v4, %v193_v7  ;;  %vm195_vm3 = vcmp.eq.f32.partialorder %v183_v4, %v193_v7 }
 0x121   : > { %vm197_vm4 = vmand %vm195_vm3, %vm196_vm1 }
 0x122   : > { %vm198_vm5 = vmor %vm194_vm2, %vm197_vm4 }
 0x123   : > { %v199_v8 = vsel %vm198_vm5, 1, %v434_v0 }
 0x124   : > { %v201_v9 = vshrl.u32 %v199_v8, 16  ;;  %v200_v11 = vand.u32 65535, %v199_v8 }
 0x126   : > { %v203_v10 = vcvt.s32.f32 %v201_v9  ;;  %v202_v12 = vcvt.s32.f32 %v200_v11 }
 0x128   : > { %206 = vadd.xlane.f32.xlu1 %v203_v10 }
 0x12c   : > { %204 = vadd.xlane.f32.xlu1 %v202_v12 }
 0x1b1   : > { %v207_v14 = vpop.xlane.xlu1 %206 }
 0x1b2   : > { %v209_v16 = vcvt.f32.s32 %v207_v14 }
 0x1b4   : > { %v210_v19 = vshll.u32 %v209_v16, 16 }
 0x1b5   : > { %v205_v18 = vpop.xlane.xlu1 %204 }
 0x1b6   : > { %v208_v20 = vcvt.f32.s32 %v205_v18 }
 0x1b8   : > { %v211_v22 = vadd.s32 %v210_v19, %v208_v20 }
 0x1ba   : > { %vm223_vm7 = vcmp.lt.s32.totalorder %v211_v22, %v324_v21 }
 0x1bb   : > { %vm226_vm8 = vmand %vm223_vm7, %vm217_vm6 }
 0x1bc   : > { %v325_v24 = vsel %vm226_vm8, 1.0, %v435_v23 }
 0x1bd   : > { %230 = vst [vmem:[%s174_s11] sm:$0xff] %v325_v24 }
 0x1be   : > { %385 = shalt.err (!%p382_p3)
}
 0x1bf   : > { %s386_s29 = scalar_lea.hbm %s522_s24, 128  ;;  %s390_s5 = scalar_lea.hbm %s566_s3, 256 }
 0x1c0   : > { %p387_p4 = scmp.ne.s32.totalorder %s522_s24, %s386_s29  ;;  %p391_p9 = scmp.lt.s32.totalorder %s522_s24, %s566_s3 }
 0x1c1   : > { %p392_p10 = scmp.lt.s32.totalorder %s390_s5, %s386_s29 }
 0x1c2   : > { %p388_p7 = pnand %p387_p4, %p495_p5 }
 0x1c3   : > { %p393_p11 = por %p392_p10, %p391_p9 }
 0x1c4   : > { %p389_p8 = pneg %p388_p7 }
 0x1c6   : > { %p394_p12 = pnand %p393_p11, %p389_p8 }
 0x1c8   : > { %397 = shalt.err (!%p394_p12)
}
 0x1c9   : > { %330 = dma.vmem_to_hbm [thread:$0]  (%p495_p5), %s524_s17, 128, %s522_s24, %s232_s25  }
 0x1ca PF: > { %p336_p13 = scmp.ge.s32.totalorder %s432_s15, 2  ;;  %s257_s8 = sand.u32 1, %s420_s12  }
 0x1cb   : > { %s258_s9 = scalar_lea.sflag [#allocation3], %s257_s8 }
 0x1cc   : > { %p333_p0 = pnand %p336_p13, %p499_p6 }
 0x1ce   : > { %p334_p1 = pneg %p333_p0 }
 0x1d0   : > { %415 = dma.done.wait (%p334_p1), %s258_s9, 128  }
 0x1d1   : > { %417 = vsyncadd (%p334_p1), %s258_s9, 4294967168  ;;  %p13_p2 = scmp.ge.s32.totalorder %s482_s18, 4   ;;  %s569_s12 = smov %s424_s13 }
 0x1d2   : > { %s570_s13 = smov %s428_s14  ;;  %s571_s14 = smov %s493_s21 }
 0x1d3   : > { %s572_s15 = smov %s482_s18  ;;  %15 = sbr.rel (!%p13_p2) target bundleno = 3 (0x3), region = 70 }
 0x1d8   :  { %263 = vsyncpa [#allocation3], 1 }
 0x1d9   :  { %265 = vsyncpa [#allocation3 + $0x1], 1 }

</bundles_post_ra>
